<compile_context>
chip_gen: v7x
topology: tpu7x:2x2x1
jax: 0.10.0
libtpu: 0.0.40
codegen_flags: <defaults>
</compile_context>

<pallas_src>
import functools

import jax
import jax.numpy as jnp
from jax.experimental import pallas as pl
from jax.experimental.pallas import tpu as pltpu

LANE = 128


def _round_up(x, m):
    return (x + m - 1) // m * m


def _plan_tiles(n):
    """Pick (n_pad, tm, tk): tm = row tile ('parallel'), tk = A-column tile ('arbitrary').

    - n_pad is a multiple of both tiles (no fallback to odd tile sizes).
    - >= 2 row tiles whenever possible so v7x's two TensorCores both get work.
    - tm <= 512, tk <= 2048 keeps the working set inside v7x's 64 MiB VMEM.
    """
    n0 = _round_up(max(n, LANE), LANE)
    tm = 512
    while tm > LANE and n0 < 2 * tm:
        tm //= 2
    n_pad = _round_up(n0, 2 * tm)
    tk = 2048
    while tk > LANE and n_pad % tk != 0:
        tk //= 2
    return n_pad, tm, tk


def _vmem_limit_bytes():
    """Generation-aware VMEM budget (v5e/v6e: 128 MiB physical, v7x: 64 MiB)."""
    try:
        cap = int(pltpu.get_tpu_info().vmem_capacity_bytes)
    except Exception:
        cap = 64 * 1024 * 1024
    return max(32 * 1024 * 1024, min(int(cap * 0.8), 112 * 1024 * 1024))


def gcn_layer_kernel(cnt_ref, idx_ref, a_ref, h_ref, dis_ref, w_ref, b_ref,
                     o_ref, acc_ref, *, activation, valid_out, scale_output,
                     h_resident, nbk, tk):
    """out(i) = act( (d_i^{-1/2} * sum_k A_bin[i,jk] @ H[jk]) @ W + b )."""
    i = pl.program_id(0)
    k = pl.program_id(1)

    @pl.when(k == 0)
    def _():
        acc_ref[...] = jnp.zeros_like(acc_ref)

    # Aggregation step; skipped entirely for padded (all-zero-block) steps.
    @pl.when(k < cnt_ref[i])
    def _():
        a_blk = a_ref[...].astype(jnp.bfloat16)        # exact 0/1 values
        if h_resident:
            j = idx_ref[i * nbk + k]                   # nonzero column-block id
            start = pl.multiple_of(j * tk, tk)
            h_blk = h_ref[pl.ds(start, tk), :]
        else:
            h_blk = h_ref[...]                         # streamed (tk, F) block
        acc_ref[...] += jnp.dot(a_blk, h_blk, preferred_element_type=jnp.float32)

    @pl.when(k == pl.num_programs(1) - 1)
    def _():
        dis = dis_ref[...]                              # (tm, 1) f32 = d_i^{-1/2}
        z = jnp.dot((acc_ref[...] * dis).astype(jnp.bfloat16), w_ref[...],
                    preferred_element_type=jnp.float32) + b_ref[...]
        if activation == "relu":
            z = jnp.maximum(z, 0.0)
            if scale_output:
                # Fold the next layer's d^{-1/2} row pre-scale into this epilogue
                # (valid because the scale is non-negative and relu already ran).
                z = z * dis
        else:  # softmax over the real output channels; padded lanes masked out
            col = jax.lax.broadcasted_iota(jnp.int32, z.shape, 1)
            z = jnp.where(col < valid_out, z, -1e30)
            z = z - jnp.max(z, axis=-1, keepdims=True)
            e = jnp.exp(z)
            z = e / jnp.sum(e, axis=-1, keepdims=True)  # exact divide (once/tile)
        o_ref[...] = z.astype(o_ref.dtype)


def gcn_layer(counts, idx_flat, a_pad, h, dis, w_pad, b_pad, *, nk_steps, tm, tk,
              activation, valid_out, scale_output, out_dtype, vmem_limit):
    n_pad = a_pad.shape[0]
    f_in_pad = h.shape[1]
    f_out_pad = w_pad.shape[1]
    assert n_pad % tm == 0 and n_pad % tk == 0, (n_pad, tm, tk)
    nbi, nbk = n_pad // tm, n_pad // tk

    # Keep H resident in VMEM (read from HBM exactly once) if it fits the budget.
    h_bytes = h.size * h.dtype.itemsize
    fixed_bytes = (2 * tm * tk                       # int8 A, double-buffered
                   + 2 * tm * f_out_pad * 4          # output blocks (f32 worst case)
                   + tm * f_in_pad * 4               # f32 accumulator scratch
                   + 2 * (w_pad.size * 2 + f_out_pad * 4 + tm * 4)
                   + (4 << 20))                      # margin
    h_resident = 2 * h_bytes + fixed_bytes <= vmem_limit

    if h_resident:
        h_spec = pl.BlockSpec((n_pad, f_in_pad), lambda i, k, cnt, idx: (0, 0))
    else:
        h_spec = pl.BlockSpec((tk, f_in_pad),
                              lambda i, k, cnt, idx: (idx[i * nbk + k], 0))

    kernel = functools.partial(
        gcn_layer_kernel, activation=activation, valid_out=valid_out,
        scale_output=scale_output, h_resident=h_resident, nbk=nbk, tk=tk)

    return pl.pallas_call(
        kernel,
        out_shape=jax.ShapeDtypeStruct((n_pad, f_out_pad), out_dtype),
        grid_spec=pltpu.PrefetchScalarGridSpec(
            num_scalar_prefetch=2,          # counts, idx_flat -> SMEM, drive index_maps
            grid=(nbi, nk_steps),
            in_specs=[
                # Adjacency tile: column block chosen from the nonzero-block table;
                # padded steps repeat the previous index so no new DMA is issued.
                pl.BlockSpec((tm, tk), lambda i, k, cnt, idx: (i, idx[i * nbk + k])),
                h_spec,                                                  # H
                pl.BlockSpec((tm, 1), lambda i, k, cnt, idx: (i, 0)),    # d^{-1/2} rows
                pl.BlockSpec((f_in_pad, f_out_pad),
                             lambda i, k, cnt, idx: (0, 0)),             # W (bf16)
                pl.BlockSpec((1, f_out_pad), lambda i, k, cnt, idx: (0, 0)),  # bias
            ],
            out_specs=pl.BlockSpec((tm, f_out_pad), lambda i, k, cnt, idx: (i, 0)),
            scratch_shapes=[pltpu.VMEM((tm, f_in_pad), jnp.float32)],
        ),
        compiler_params=pltpu.CompilerParams(
            dimension_semantics=("parallel", "arbitrary"),
            vmem_limit_bytes=vmem_limit,
        ),
    )(counts, idx_flat, a_pad, h, dis, w_pad, b_pad)


def build_binary_adjacency(edge_index, num_nodes, n_pad):
    """Padded 0/1 int8 (A + I) built directly in its streaming dtype, plus d^{-1/2}."""
    src = edge_index[0].astype(jnp.int32)
    tgt = edge_index[1].astype(jnp.int32)
    ones = jnp.ones(src.shape, jnp.int8)
    a = jnp.zeros((n_pad, n_pad), jnp.int8)
    a = a.at[tgt, src].set(ones)                     # directed edges
    a = a.at[src, tgt].set(ones)                     # symmetrize (undirected)
    diag = jnp.arange(num_nodes)
    a = a.at[diag, diag].set(jnp.ones((num_nodes,), jnp.int8))   # self loops
    deg = jnp.sum(a, axis=1, dtype=jnp.int32).astype(jnp.float32)
    d_inv_sqrt = jnp.where(deg > 0, jax.lax.rsqrt(jnp.maximum(deg, 1.0)), 0.0)
    return a, d_inv_sqrt


def gcn_forward(x, edge_index, params):
    """dropout(eval=id) -> GCNConv -> relu -> dropout -> GCNConv -> softmax."""
    n, f_in = x.shape
    out_channels = params[-1][0].shape[1]

    n_pad, tm, tk = _plan_tiles(n)
    nbi, nbk = n_pad // tm, n_pad // tk

    a_pad, d_inv_sqrt = build_binary_adjacency(edge_index, n, n_pad)

    # Block-sparsity schedule: per row tile, the column-block ids that contain any
    # nonzero, front-packed and padded with the last valid id (DMA dedups repeats).
    occ = jnp.any(a_pad.reshape(nbi, tm, nbk, tk) != 0, axis=(1, 3))
    counts = jnp.sum(occ, axis=1).astype(jnp.int32)
    order = jnp.argsort(jnp.logical_not(occ).astype(jnp.int32), axis=1).astype(jnp.int32)
    last = order[jnp.arange(nbi), jnp.maximum(counts - 1, 0)][:, None]
    pos = jnp.arange(nbk, dtype=jnp.int32)[None, :]
    idx_flat = jnp.where(pos < counts[:, None], order, last).reshape(-1).astype(jnp.int32)
    # Static grid extent = max nonzero blocks per row tile (host sync; glue only).
    nk_steps = max(int(jnp.max(counts)), 1)

    dis = d_inv_sqrt.reshape(n_pad, 1)

    # Layer-0 input: rows pre-scaled by d^{-1/2}; later layers get this scale folded
    # into the previous epilogue.  Zero-padded to 128 lanes, stored bf16.
    f_in_pad = _round_up(f_in, LANE)
    h = jnp.zeros((n_pad, f_in_pad), jnp.bfloat16).at[:n, :f_in].set(
        (x * d_inv_sqrt[:n, None]).astype(jnp.bfloat16))

    vmem_limit = _vmem_limit_bytes()

    num_layers = len(params)
    for li, (w, b) in enumerate(params):
        fi, fo = w.shape
        fi_pad, fo_pad = _round_up(fi, LANE), _round_up(fo, LANE)
        w_pad = jnp.zeros((fi_pad, fo_pad), jnp.bfloat16).at[:fi, :fo].set(
            w.astype(jnp.bfloat16))
        b_pad = jnp.zeros((1, fo_pad), jnp.float32).at[0, :fo].set(b)
        is_last = li == num_layers - 1
        h = gcn_layer(
            counts, idx_flat, a_pad, h, dis, w_pad, b_pad,
            nk_steps=nk_steps, tm=tm, tk=tk,
            activation="softmax" if is_last else "relu",
            valid_out=fo, scale_output=not is_last,
            out_dtype=jnp.float32 if is_last else jnp.bfloat16,
            vmem_limit=vmem_limit,
        )
    return h[:n, :out_channels]


def reference_forward(x, edge_index, params):
    """Pure-JAX f32 reference of the same forward pass (for correctness check)."""
    n = x.shape[0]
    src, tgt = edge_index[0], edge_index[1]
    a = jnp.zeros((n, n), jnp.float32).at[tgt, src].set(1.0)
    a = jnp.maximum(a, a.T)
    a = jnp.maximum(a, jnp.eye(n, dtype=jnp.float32))
    d_inv_sqrt = 1.0 / jnp.sqrt(jnp.sum(a, axis=1))
    a_hat = d_inv_sqrt[:, None] * a * d_inv_sqrt[None, :]
    h = x
    for w, b in params[:-1]:
        h = jnp.maximum(a_hat @ (h @ w) + b, 0.0)
    w, b = params[-1]
    return jax.nn.softmax(a_hat @ (h @ w) + b, axis=-1)


def glorot(key, shape):
    fan_in, fan_out = shape
    limit = jnp.sqrt(6.0 / (fan_in + fan_out))
    return jax.random.uniform(key, shape, jnp.float32, -limit, limit)


if __name__ == "__main__":
    # Small synthetic problem consistent with the module's forward.
    # TODO(synk): F.dropout is omitted (eval / training=False -> identity).
    num_nodes = 96
    in_channels = 16
    hidden_channels = 64
    out_channels = 8
    num_edges = 256

    key = jax.random.PRNGKey(0)
    k_x, k_e, k_w1, k_w2 = jax.random.split(key, 4)

    x = jax.random.normal(k_x, (num_nodes, in_channels), jnp.float32)
    edge_index = jax.random.randint(k_e, (2, num_edges), 0, num_nodes, jnp.int32)

    # Deterministic params (glorot weights, zero bias, as in PyG GCNConv).
    params = [
        (glorot(k_w1, (in_channels, hidden_channels)),
         jnp.zeros((hidden_channels,), jnp.float32)),
        (glorot(k_w2, (hidden_channels, out_channels)),
         jnp.zeros((out_channels,), jnp.float32)),
    ]

    out = jax.block_until_ready(gcn_forward(x, edge_index, params))

    assert out.shape == (num_nodes, out_channels)
    # final softmax uses an exact divide -> rows sum to 1 tightly
    assert jnp.allclose(jnp.sum(out, axis=-1), 1.0, atol=1e-3)
    ref = reference_forward(x, edge_index, params)
    assert jnp.allclose(out, ref, atol=3e-2), float(jnp.max(jnp.abs(out - ref)))
    print("KERNEL_OK")
</pallas_src>

<mosaic_0001>
module attributes {stable_mosaic.version = 11 : i64} {
  func.func @gcn_layer_kernel(%arg0: i32, %arg1: i32, %arg2: memref<2xi32, #tpu.memory_space<smem>>, %arg3: memref<2xi32, #tpu.memory_space<smem>>, %arg4: memref<128x256xi8, #tpu.memory_space<vmem>>, %arg5: memref<256x128xbf16, #tpu.memory_space<vmem>>, %arg6: memref<128x1xf32, #tpu.memory_space<vmem>>, %arg7: memref<128x128xbf16, #tpu.memory_space<vmem>>, %arg8: memref<1x128xf32, #tpu.memory_space<vmem>>, %arg9: memref<128x128xbf16, #tpu.memory_space<vmem>>, %arg10: memref<128x128xf32, #tpu.memory_space<vmem>>) attributes {dimension_semantics = [#tpu.dimension_semantics<parallel>, #tpu.dimension_semantics<arbitrary>], iteration_bounds = array<i64: 2, 1>, scalar_prefetch = 2 : i64, scratch_operands = 1 : i64, tpu.core_type = #tpu.core_type<tc>, window_params = [{transform_indices = @transform_0, window_bounds = array<i64: 128, 256>}, {pipeline_mode = #tpu.pipeline_mode<synchronous>, transform_indices = @transform_1, window_bounds = array<i64: 256, 128>}, {transform_indices = @transform_2, window_bounds = array<i64: 128, 1>}, {pipeline_mode = #tpu.pipeline_mode<synchronous>, transform_indices = @transform_3, window_bounds = array<i64: 128, 128>}, {pipeline_mode = #tpu.pipeline_mode<synchronous>, transform_indices = @transform_4, window_bounds = array<i64: 1, 128>}, {transform_indices = @transform_5, window_bounds = array<i64: 128, 128>}]} {
    %c0_i32 = arith.constant 0 : i32
    %0 = arith.cmpi eq, %arg1, %c0_i32 : i32
    %1 = arith.extui %0 : i1 to i32
    %c0_i32_0 = arith.constant 0 : i32
    %2 = arith.cmpi ne, %1, %c0_i32_0 : i32
    scf.if %2 {
      %cst = arith.constant 0.000000e+00 : f32
      %11 = vector.broadcast %cst : f32 to vector<128x128xf32>
      %c0 = arith.constant 0 : index
      %c0_4 = arith.constant 0 : index
      %12 = vector.load %arg10[%c0, %c0_4] : memref<128x128xf32, #tpu.memory_space<vmem>>, vector<128x128xf32>
      tpu.vector_store %arg10[%c0, %c0_4], %11 {strides = array<i32>} : memref<128x128xf32, #tpu.memory_space<vmem>>, vector<128x128xf32>,
    } else {
    }
    %3 = arith.index_cast %arg0 : i32 to index
    %4 = memref.load %arg2[%3] : memref<2xi32, #tpu.memory_space<smem>>
    %5 = arith.cmpi slt, %arg1, %4 : i32
    %6 = arith.extui %5 : i1 to i32
    %c0_i32_1 = arith.constant 0 : i32
    %7 = arith.cmpi ne, %6, %c0_i32_1 : i32
    scf.if %7 {
      %c0 = arith.constant 0 : index
      %c0_4 = arith.constant 0 : index
      %11 = vector.load %arg4[%c0, %c0_4] : memref<128x256xi8, #tpu.memory_space<vmem>>, vector<128x256xi8>
      %12 = arith.sitofp %11 : vector<128x256xi8> to vector<128x256xbf16>
      %c1_i32 = arith.constant 1 : i32
      %13 = arith.muli %arg0, %c1_i32 : i32
      %14 = arith.addi %13, %arg1 : i32
      %15 = arith.index_cast %14 : i32 to index
      %16 = memref.load %arg3[%15] : memref<2xi32, #tpu.memory_space<smem>>
      %c256_i32 = arith.constant 256 : i32
      %17 = arith.muli %16, %c256_i32 : i32
      %18 = tpu.assume_multiple %17, 256 : i32
      %19 = arith.index_cast %18 : i32 to index
      %c0_5 = arith.constant 0 : index
      %20 = vector.load %arg5[%19, %c0_5] : memref<256x128xbf16, #tpu.memory_space<vmem>>, vector<256x128xbf16>
      %c0_6 = arith.constant 0 : index
      %c0_7 = arith.constant 0 : index
      %21 = vector.load %arg10[%c0_6, %c0_7] : memref<128x128xf32, #tpu.memory_space<vmem>>, vector<128x128xf32>
      %cst = arith.constant dense<0.000000e+00> : vector<128x128xf32>
      %22 = tpu.matmul %12, %20, %cst {dimension_numbers = #tpu.dot_dimension_numbers<[1], [0], [0], [1], [0, 0, 1, 1], [], []>} : vector<128x256xbf16>, vector<256x128xbf16>, vector<128x128xf32> -> vector<128x128xf32>
      %23 = arith.addf %21, %22 : vector<128x128xf32>
      %c0_8 = arith.constant 0 : index
      %c0_9 = arith.constant 0 : index
      %24 = vector.load %arg10[%c0_8, %c0_9] : memref<128x128xf32, #tpu.memory_space<vmem>>, vector<128x128xf32>
      tpu.vector_store %arg10[%c0_8, %c0_9], %23 {strides = array<i32>} : memref<128x128xf32, #tpu.memory_space<vmem>>, vector<128x128xf32>,
    } else {
    }
    %c0_i32_2 = arith.constant 0 : i32
    %8 = arith.cmpi eq, %arg1, %c0_i32_2 : i32
    %9 = arith.extui %8 : i1 to i32
    %c0_i32_3 = arith.constant 0 : i32
    %10 = arith.cmpi ne, %9, %c0_i32_3 : i32
    scf.if %10 {
      %c0 = arith.constant 0 : index
      %c0_4 = arith.constant 0 : index
      %11 = vector.load %arg6[%c0, %c0_4] : memref<128x1xf32, #tpu.memory_space<vmem>>, vector<128x1xf32>
      %c0_5 = arith.constant 0 : index
      %c0_6 = arith.constant 0 : index
      %12 = vector.load %arg10[%c0_5, %c0_6] : memref<128x128xf32, #tpu.memory_space<vmem>>, vector<128x128xf32>
      %13 = vector.broadcast %11 : vector<128x1xf32> to vector<128x128xf32>
      %14 = arith.mulf %12, %13 : vector<128x128xf32>
      %15 = arith.truncf %14 : vector<128x128xf32> to vector<128x128xbf16>
      %c0_7 = arith.constant 0 : index
      %c0_8 = arith.constant 0 : index
      %16 = vector.load %arg7[%c0_7, %c0_8] : memref<128x128xbf16, #tpu.memory_space<vmem>>, vector<128x128xbf16>
      %cst = arith.constant dense<0.000000e+00> : vector<128x128xf32>
      %17 = tpu.matmul %15, %16, %cst {dimension_numbers = #tpu.dot_dimension_numbers<[1], [0], [0], [1], [0, 0, 1, 1], [], []>} : vector<128x128xbf16>, vector<128x128xbf16>, vector<128x128xf32> -> vector<128x128xf32>
      %c0_9 = arith.constant 0 : index
      %c0_10 = arith.constant 0 : index
      %18 = vector.load %arg8[%c0_9, %c0_10] : memref<1x128xf32, #tpu.memory_space<vmem>>, vector<1x128xf32>
      %19 = vector.broadcast %18 : vector<1x128xf32> to vector<128x128xf32>
      %20 = arith.addf %17, %19 : vector<128x128xf32>
      %cst_11 = arith.constant 0.000000e+00 : f32
      %21 = vector.broadcast %cst_11 : f32 to vector<128x128xf32>
      %22 = arith.maximumf %20, %21 : vector<128x128xf32>
      %23 = vector.broadcast %11 : vector<128x1xf32> to vector<128x128xf32>
      %24 = arith.mulf %22, %23 : vector<128x128xf32>
      %25 = arith.truncf %24 : vector<128x128xf32> to vector<128x128xbf16>
      %c0_12 = arith.constant 0 : index
      %c0_13 = arith.constant 0 : index
      %26 = vector.load %arg9[%c0_12, %c0_13] : memref<128x128xbf16, #tpu.memory_space<vmem>>, vector<128x128xbf16>
      tpu.vector_store %arg9[%c0_12, %c0_13], %25 {strides = array<i32>} : memref<128x128xbf16, #tpu.memory_space<vmem>>, vector<128x128xbf16>,
    } else {
    }
    return
  }
  func.func @transform_0(%arg0: i32, %arg1: i32, %arg2: memref<2xi32, #tpu.memory_space<smem>>, %arg3: memref<2xi32, #tpu.memory_space<smem>>) -> (i32, i32) {
    %c1_i32 = arith.constant 1 : i32
    %0 = arith.muli %arg0, %c1_i32 : i32
    %1 = arith.addi %0, %arg1 : i32
    %2 = arith.index_cast %1 : i32 to index
    %3 = memref.load %arg3[%2] : memref<2xi32, #tpu.memory_space<smem>>
    %c0_i32 = arith.constant 0 : i32
    return %arg0, %3 : i32, i32
  }
  func.func @transform_1(%arg0: i32, %arg1: i32, %arg2: memref<2xi32, #tpu.memory_space<smem>>, %arg3: memref<2xi32, #tpu.memory_space<smem>>) -> (i32, i32) {
    %c0_i32 = arith.constant 0 : i32
    %c0_i32_0 = arith.constant 0 : i32
    %c0_i32_1 = arith.constant 0 : i32
    return %c0_i32, %c0_i32_0 : i32, i32
  }
  func.func @transform_2(%arg0: i32, %arg1: i32, %arg2: memref<2xi32, #tpu.memory_space<smem>>, %arg3: memref<2xi32, #tpu.memory_space<smem>>) -> (i32, i32) {
    %c0_i32 = arith.constant 0 : i32
    %c0_i32_0 = arith.constant 0 : i32
    return %arg0, %c0_i32 : i32, i32
  }
  func.func @transform_3(%arg0: i32, %arg1: i32, %arg2: memref<2xi32, #tpu.memory_space<smem>>, %arg3: memref<2xi32, #tpu.memory_space<smem>>) -> (i32, i32) {
    %c0_i32 = arith.constant 0 : i32
    %c0_i32_0 = arith.constant 0 : i32
    %c0_i32_1 = arith.constant 0 : i32
    return %c0_i32, %c0_i32_0 : i32, i32
  }
  func.func @transform_4(%arg0: i32, %arg1: i32, %arg2: memref<2xi32, #tpu.memory_space<smem>>, %arg3: memref<2xi32, #tpu.memory_space<smem>>) -> (i32, i32) {
    %c0_i32 = arith.constant 0 : i32
    %c0_i32_0 = arith.constant 0 : i32
    %c0_i32_1 = arith.constant 0 : i32
    return %c0_i32, %c0_i32_0 : i32, i32
  }
  func.func @transform_5(%arg0: i32, %arg1: i32, %arg2: memref<2xi32, #tpu.memory_space<smem>>, %arg3: memref<2xi32, #tpu.memory_space<smem>>) -> (i32, i32) {
    %c0_i32 = arith.constant 0 : i32
    %c0_i32_0 = arith.constant 0 : i32
    return %arg0, %c0_i32 : i32, i32
  }
}

</mosaic_0001>

<bundles_post_ra>
// kernel: tpu_custom_call.1
= control target key start
LH: loop header
LB: loop body
LE: loop exit
PB: predicated region body
PF: predicated region fallthrough
CT: control target
= control target key end

     0   :  { %s2073_s0 = inlined_call_operand.vmem [shape: s32[2], index: 0, kind: input, shape index: {}]   ;;  %s2074_s2 = inlined_call_operand.vmem [shape: s8[256,256], index: 2, kind: input, shape index: {}]   ;;  %s2075_s3 = inlined_call_operand.vmem [shape: bf16[256,128], index: 3, kind: input, shape index: {}]   ;;  %s2076_s4 = inlined_call_operand.vmem [shape: f32[256,1], index: 4, kind: input, shape index: {}]   ;;  %s2077_s5 = inlined_call_operand.hbm [shape: bf16[128,128], index: 5, kind: input, shape index: {}]   ;;  %s2078_s6 = inlined_call_operand.vmem [shape: f32[1,128], index: 6, kind: input, shape index: {}]   ;;  %s2079_s7 = inlined_call_operand.hbm [shape: bf16[256,128], index: 7, kind: output, shape index: {}]   ;;  %s2080_s1 = inlined_call_operand.vmem [shape: s32[2], index: 1, kind: input, shape index: {}]  }
   0x1   :  { %2087 = sst [smem:[#allocation14_spill]] %s2077_s5  ;;  %s12_s26 = sshll.u32 %s2073_s0, 4  ;;  %s13_s26 = int_to_ptr.vmem [resolvable:$true] %s12_s26 }
   0x2   :  { %s16_s29 = sshll.u32 %s2080_s1, 4  ;;  %s1557_s30 = scalar_lea.vmem %s13_s26, 16  ;;  %s17_s29 = int_to_ptr.vmem [resolvable:$true] %s16_s29 }
   0x3   :  { %p1558_p0 = scmp.ne.s32.totalorder %s13_s26, %s1557_s30  ;;  %p1562_p1 = scmp.lt.s32.totalorder %s13_s26, %s13_s26 }
   0x4   :  { %p1563_p2 = scmp.lt.s32.totalorder %s1557_s30, %s1557_s30 }
   0x6   :  { %p1564_p3 = por %p1563_p2, %p1562_p1 }
   0x8   :  { %p1565_p4 = pnand %p1564_p3, %p1558_p0 }
   0xa   :  { %1568 = shalt.err (!%p1565_p4)  }
   0xb   :  { %s1695_s8 = smov [#allocation4]   ;;  %s1569_s9 = scalar_lea.vmem %s17_s29, 16 }
   0xc   :  { %15 = dma.vmem_to_smem %s13_s26, 16, %s1695_s8, [#allocation3] }
   0xd   :  { %p1570_p5 = scmp.ne.s32.totalorder %s17_s29, %s1569_s9  ;;  %p1574_p6 = scmp.lt.s32.totalorder %s17_s29, %s17_s29 }
   0xe   :  { %p1575_p7 = scmp.lt.s32.totalorder %s1569_s9, %s1569_s9 }
  0x10   :  { %p1576_p8 = por %p1575_p7, %p1574_p6 }
  0x12   :  { %p1577_p9 = pnand %p1576_p8, %p1570_p5 }
  0x14   :  { %1580 = shalt.err (!%p1577_p9)  }
  0x15   :  { %s1696_s0 = smov [#allocation5]  }
  0x16   :  { %19 = dma.vmem_to_smem %s17_s29, 16, %s1696_s0, [#allocation3] }
  0x17   :  { %1661 = dma.done.wait [#allocation3], 32 }
  0x18   :  { %1662 = vsyncadd [#allocation3], 4294967264 }
  0x19   :  { %21 = sfence }
  0x1a   :  { %22 = vsyncpa [#allocation7], 0 }
  0x1b   :  { %23 = vsyncpa [#allocation8], 0 }
  0x1c   :  { %25 = vsyncpa [#allocation8 + $0x1], 0  ;;  %s1751_s1 = smov 0   ;;  %s1753_s10 = smov 0  }
  0x1d   :  { %s1755_s11 = smov 0   ;;  %s1757_s12 = smov 0  }
  0x1e   :  { %s1759_s13 = smov 0   ;;  %s1761_s14 = smov 0  }
  0x1f LB: > { %s1185_s15 = sadd.s32 4294967295, %s1693_s14   ;;  %s1186_s16 = sadd.s32 4294967294, %s1693_s14   ;;  %s1693_s14 = sphi %s1761_s14, %s31_s14   ;;  %s1689_s13 = sphi %s1759_s13, %s2106_s13   ;;  %s1685_s12 = sphi %s1757_s12, %s2105_s12   ;;  %s1681_s11 = sphi %s1755_s11, %s2104_s11   ;;  %s1677_s10 = sphi %s1753_s10, %s2103_s10   ;;  %s1673_s1 = sphi %s1751_s1, %s2102_s1  }
  0x20   : > { %s43_s17 = sadd.s32 1, %s1689_s13  ;;  %s171_s18 = sadd.s32 1, %s1681_s11 }
  0x21   : > { %p45_p10 = scmp.ge.s32.totalorder %s43_s17, 2  ;;  %p181_p11 = scmp.ne.s32.totalorder %s1681_s11, %s1677_s10 }
  0x22   : > { %p182_p12 = scmp.eq.s32.totalorder %s1185_s15, 1  ;;  %p187_p13 = scmp.ne.s32.totalorder %s1677_s10, %s1673_s1 }
  0x23   : > { %s2108_s17 = smov (%p45_p10, %s43_s17), 0  ;;  %p188_p1 = scmp.eq.s32.totalorder %s1186_s16, 1 }
  0x24   : > { %2088 = sst [smem:[#allocation13_spill]] %s2108_s17  ;;  %p1791_p0 = por %p182_p12, %p181_p11 }
  0x25   : > { %s168_s20 = ssub.s32 %s1689_s13, %s2108_s17  ;;  %p1187_p2 = scmp.ge.s32.totalorder %s1693_s14, 1 }
  0x26   : > { %s2089_s19 = scalar_select %p1791_p0, 1, 0 }
  0x27   : > { %p169_p3 = scmp.eq.s32.totalorder %s168_s20, 0  ;;  %p1798_p4 = por %p188_p1, %p187_p13 }
  0x28   : > { %p195_p5 = scmp.lt.s32.totalorder %s1693_s14, 3  ;;  %p1810_p7 = scmp.eq.s32.totalorder %s1185_s15, 0 }
  0x29   : > { %s2090_s21 = scalar_select %p1798_p4, 1, 0 }
  0x2a   : > { %s1804_s22 = scalar_select %p169_p3, %s1681_s11, %s171_s18  }
  0x2b   : > { %p1806_p6 = pnand %p1187_p2, %p195_p5  ;;  %s1697_s25 = smov [#allocation6]  }
  0x2c   : > { %s2092_s24 = scalar_select %p1810_p7, 1, 0 }
  0x2d   : > { %s2091_s23 = scalar_select %p1806_p6, 1, 0 }
  0x2e   : > { %p1463_p8 = pneg %p1806_p6  ;;  %s210_s26 = sshll.u32 %s1697_s25, 4  ;;  %s211_s26 = int_to_ptr.vmem [resolvable:$true] %s210_s26 }
  0x2f   : > { %s2094_s5 = sld [smem:[#allocation14_spill]] }
  0x30   : > { %p1818_p9 = pnand %p1810_p7, %p1463_p8 }
  0x32   : > { %p1583_p11 = pneg %p1818_p9 }
  0x35   : > { %s1581_s30 = scalar_lea.hbm %s2094_s5, 1024 }
  0x36   : > { %p1582_p10 = scmp.ne.s32.totalorder %s2094_s5, %s1581_s30  ;;  %p1588_p1 = scmp.lt.u32.totalorder %s1581_s30, %s2094_s5 }
  0x38   : > { %p1584_p12 = pnand %p1583_p11, %p1582_p10 }
  0x3a   : > { %p1585_p13 = pneg %p1584_p12 }
  0x3c   : > { %p1590_p2 = pnand %p1588_p1, %p1585_p13 }
  0x3e   : > { %1593 = shalt.err (!%p1590_p2)
}
  0x3f   : > { %s1594_s16 = scalar_lea.vmem %s211_s26, 1024  ;;  %p1602_p4 = scmp.lt.s32.totalorder %s211_s26, %s211_s26 }
  0x40   : > { %p1595_p3 = scmp.ne.s32.totalorder %s211_s26, %s1594_s16  ;;  %p1603_p0 = scmp.lt.s32.totalorder %s1594_s16, %s1594_s16 }
  0x42   : > { %p1597_p5 = pnand %p1595_p3, %p1583_p11  ;;  %p1604_p7 = por %p1603_p0, %p1602_p4 }
  0x44   : > { %p1598_p8 = pneg %p1597_p5 }
  0x46   : > { %p1605_p6 = pnand %p1604_p7, %p1598_p8 }
  0x48   : > { %1608 = shalt.err (!%p1605_p6)
}
  0x49   : > { %s1698_s18 = smov 64   ;;  %s1699_s20 = smov 4  }
  0x4a   : > { %1466 = dma.hbm_to_vmem [thread:$0]  (!%p1818_p9), %s2094_s5, 1024, %s211_s26, [#allocation7], %s1698_s18, %s1698_s18, %s1699_s20  }
  0x4b   : > { %p2095_p10 = scmp.ne.s32.totalorder %s2091_s23, 0 }
  0x4c   : > { %p2096_p12 = scmp.ne.s32.totalorder (!%p2095_p10), %s2092_s24, 0 }
  0x4d   : > { %257 = sbr.rel (%p2095_p10) target bundleno = 782 (0x30e), region = 40 }
  0x54   : > { %1664 = dma.done.wait (%p2096_p12), [#allocation7], 1024  }
  0x55   : > { %1666 = vsyncadd (%p2096_p12), [#allocation7], 4294966272  ;;  %s1193_s29 = sshll.u32 %s1685_s12, 2  ;;  %s2086_s30 = sand.u32 1, %s1677_s10   ;;  %v1700_v0 = vmov 0.0  }
  0x56   : > { %s298_s8 = sld [smem:[#allocation5 + %s1685_s12]]  ;;  %p1847_p0 = scmp.lt.s32.totalorder %s1193_s29, 7  ;;  %325 = vst [vmem:[#allocation2] sm:$0xff] %v1700_v0  ;;  %326 = vst [vmem:[#allocation2 + $0x8] sm:$0xff] %v1700_v0 }
  0x57   : > { %327 = vst [vmem:[#allocation2 + $0x10] sm:$0xff] %v1700_v0  ;;  %328 = vst [vmem:[#allocation2 + $0x18] sm:$0xff] %v1700_v0  ;;  %s341_s23 = sld [smem:[#allocation4 + %s1685_s12]]  ;;  %s1192_s24 = sshll.u32 %s2086_s30, 6 }
  0x58   : > { %329 = vst [vmem:[#allocation2 + $0x20] sm:$0xff] %v1700_v0  ;;  %330 = vst [vmem:[#allocation2 + $0x28] sm:$0xff] %v1700_v0  ;;  %s2110_s29 = smov (!%p1847_p0, %s1193_s29), 7  ;;  %s1197_s26 = sshll.u32 %s1685_s12, 4 }
  0x59   : > { %331 = vst [vmem:[#allocation2 + $0x30] sm:$0xff] %v1700_v0  ;;  %332 = vst [vmem:[#allocation2 + $0x38] sm:$0xff] %v1700_v0  ;;  %p314_p4 = scmp.lt.s32.totalorder %s1197_s26, 31  ;;  %s1195_s0 = sshll.u32 %s2110_s29, 1 }
  0x5a   : > { %333 = vst [vmem:[#allocation2 + $0x40] sm:$0xff] %v1700_v0  ;;  %334 = vst [vmem:[#allocation2 + $0x48] sm:$0xff] %v1700_v0  ;;  %s1867_s30 = scalar_lea.vmem [#allocation9], %s1192_s24 }
  0x5b   : > { %335 = vst [vmem:[#allocation2 + $0x50] sm:$0xff] %v1700_v0  ;;  %336 = vst [vmem:[#allocation2 + $0x58] sm:$0xff] %v1700_v0  ;;  %s2112_s26 = smov (!%p314_p4, %s1197_s26), 31 }
  0x5c   : > { %337 = vst [vmem:[#allocation2 + $0x60] sm:$0xff] %v1700_v0  ;;  %338 = vst [vmem:[#allocation2 + $0x68] sm:$0xff] %v1700_v0  ;;  %s1194_s9 = sshll.u32 %s298_s8, 1  ;;  %s1198_s15 = sshll.u32 %s2112_s26, 3 }
  0x5d   : > { %339 = vst [vmem:[#allocation2 + $0x70] sm:$0xff] %v1700_v0  ;;  %340 = vst [vmem:[#allocation2 + $0x78] sm:$0xff] %v1700_v0  ;;  %p303_p6 = scmp.lt.s32.totalorder %s1194_s9, 1  ;;  %s1860_s25 = scalar_lea.vmem %s2076_s4, %s1198_s15 }
  0x5e   : > { %p1200_p7 = scmp.le.s32.totalorder %s341_s23, 0 }
  0x5f   : > { %s2114_s9 = smov (!%p303_p6, %s1194_s9), 1  ;;  %s371_s29 = sld [smem:[#allocation5 + %s1685_s12]] (!%p1200_p7)  ;;  %v409_v43 = vld [vmem:[#allocation2] sm:$0xff] (!%p1200_p7)  ;;  %v410_v51 = vld [vmem:[#allocation2 + $0x8] sm:$0xff] (!%p1200_p7)  ;;  %v411_v63 = vld [vmem:[#allocation2 + $0x10] sm:$0xff] (!%p1200_p7) }
  0x60   : > { %s306_s16 = sadd.s32 %s1195_s0, %s2114_s9  ;;  %345 = sbr.rel (%p1200_p7) target bundleno = 382 (0x17e), region = 52 }
  0x61   : > { %s1196_s28 = sshll.u32 %s306_s16, 3  ;;  %v417_v45 = vld [vmem:[#allocation2 + $0x40] sm:$0xff] (!%p1200_p7)  ;;  %v418_v53 = vld [vmem:[#allocation2 + $0x48] sm:$0xff] (!%p1200_p7) }
  0x62   : > { %s1865_s27 = scalar_lea.vmem %s2074_s2, %s1196_s28 }
  0x63   : > { %v1871_v1 = vld [vmem:[%s1865_s27 + $0x8] sm:$0xff] (!%p1200_p7)  ;;  %v346_v21 = vld [vmem:[%s1865_s27] sm:$0xff] (!%p1200_p7)  ;;  %v349_v27 = vld [vmem:[%s1865_s27 + $0x18] sm:$0xff] (!%p1200_p7) }
  0x64   : > { %v1874_v2 = vld [vmem:[%s1865_s27 + $0x28] sm:$0xff] (!%p1200_p7)  ;;  %v355_v3 = vunpack.c.l.s8.bf16 (!%p1200_p7), %v1871_v1  ;;  %v350_v22 = vld [vmem:[%s1865_s27 + $0x20] sm:$0xff] (!%p1200_p7)  ;;  %v354_v23 = vunpack.c.l.s8.bf16 (!%p1200_p7), %v346_v21  ;;  %v357_v25 = vunpack.c.h.s8.bf16 (!%p1200_p7), %v1871_v1  ;;  %v353_v28 = vld [vmem:[%s1865_s27 + $0x38] sm:$0xff] (!%p1200_p7)  ;;  %v356_v29 = vunpack.c.h.s8.bf16 (!%p1200_p7), %v346_v21 }
  0x65   : > { %v363_v4 = vunpack.c.l.s8.bf16 (!%p1200_p7), %v1874_v2  ;;  %s1201_s5 = sshll.u32 (!%p1200_p7), %s371_s29, 8  ;;  %v362_v24 = vunpack.c.l.s8.bf16 (!%p1200_p7), %v350_v22  ;;  %v365_v26 = vunpack.c.h.s8.bf16 (!%p1200_p7), %v1874_v2  ;;  %v364_v30 = vunpack.c.h.s8.bf16 (!%p1200_p7), %v350_v22  ;;  %v348_v33 = vld [vmem:[%s1865_s27 + $0x10] sm:$0xff] (!%p1200_p7)  ;;  %v421_v21 = vld [vmem:[#allocation2 + $0x60] sm:$0xff] (!%p1200_p7) }
  0x66   : > { %553 = vmatprep.mubr.bf16.mxu0 (!%p1200_p7), %v355_v3  ;;  %s373_s17 = sshra.s32 (!%p1200_p7), %s1201_s5, 3  ;;  %v359_v31 = vunpack.c.l.s8.bf16 (!%p1200_p7), %v349_v27  ;;  %v367_v32 = vunpack.c.l.s8.bf16 (!%p1200_p7), %v353_v28  ;;  %v352_v34 = vld [vmem:[%s1865_s27 + $0x30] sm:$0xff] (!%p1200_p7)  ;;  %v358_v35 = vunpack.c.l.s8.bf16 (!%p1200_p7), %v348_v33  ;;  %v361_v37 = vunpack.c.h.s8.bf16 (!%p1200_p7), %v349_v27  ;;  %v414_v27 = vld [vmem:[#allocation2 + $0x28] sm:$0xff] (!%p1200_p7) }
  0x67   : > { %585 = vmatprep.mubr.bf16.mxu1 %v363_v4  ;;  %s1202_s8 = sshll.u32 %s373_s17, 2  ;;  %v366_v36 = vunpack.c.l.s8.bf16 %v352_v34  ;;  %v369_v38 = vunpack.c.h.s8.bf16 %v353_v28  ;;  %v360_v39 = vunpack.c.h.s8.bf16 %v348_v33  ;;  %v368_v40 = vunpack.c.h.s8.bf16 %v352_v34  ;;  %v419_v1 = vld [vmem:[#allocation2 + $0x50] sm:$0xff] }
  0x68   : > { %s1881_s26 = scalar_lea.vmem %s2075_s3, %s1202_s8 }
  0x69   : > { %v1531_v5 = vld [vmem:[%s1881_s26 + $0x40] sm:$0xff]   ;;  %v1533_v7 = vld [vmem:[%s1881_s26 + $0x48] sm:$0xff]   ;;  %v1535_v9 = vld [vmem:[%s1881_s26 + $0x50] sm:$0xff]  }
  0x6a   : > { %v1532_v6 = vld [vmem:[%s1881_s26] sm:$0xff]   ;;  %1313 = vmatprep.subr.bf16.mxu0 %v1531_v5  ;;  %1425 = vmatprep.subr.bf16.mxu1 %v1531_v5  ;;  %v1534_v8 = vld [vmem:[%s1881_s26 + $0x8] sm:$0xff]   ;;  %v1536_v10 = vld [vmem:[%s1881_s26 + $0x10] sm:$0xff]  }
  0x6b   : > { %1314 = vmatpush3.bf16.msra.mxu0 %v1532_v6  ;;  %1433 = vmatpush3.bf16.msra.mxu1 %v1532_v6  ;;  %v1537_v11 = vld [vmem:[%s1881_s26 + $0x58] sm:$0xff]   ;;  %v1539_v13 = vld [vmem:[%s1881_s26 + $0x60] sm:$0xff]   ;;  %v1541_v15 = vld [vmem:[%s1881_s26 + $0x68] sm:$0xff]  }
  0x6c   : > { %1315 = vmatprep.subr.bf16.mxu0 %v1533_v7  ;;  %1426 = vmatprep.subr.bf16.mxu1 %v1533_v7  ;;  %v1538_v12 = vld [vmem:[%s1881_s26 + $0x18] sm:$0xff]   ;;  %v1540_v14 = vld [vmem:[%s1881_s26 + $0x20] sm:$0xff]   ;;  %v1542_v16 = vld [vmem:[%s1881_s26 + $0x28] sm:$0xff]  }
  0x6d   : > { %v1543_v17 = vld [vmem:[%s1881_s26 + $0x70] sm:$0xff]   ;;  %v1545_v19 = vld [vmem:[%s1881_s26 + $0x78] sm:$0xff]  }
  0x6e   : > { %v1544_v18 = vld [vmem:[%s1881_s26 + $0x30] sm:$0xff]   ;;  %v1546_v20 = vld [vmem:[%s1881_s26 + $0x38] sm:$0xff]  }
  0x6f   : > { %1316 = vmatpush3.bf16.msra.mxu0 %v1534_v8  ;;  %1434 = vmatpush3.bf16.msra.mxu1 %v1534_v8  ;;  %v412_v7 = vld [vmem:[#allocation2 + $0x18] sm:$0xff] }
  0x70   : > { %1317 = vmatprep.subr.bf16.mxu0 %v1535_v9  ;;  %1427 = vmatprep.subr.bf16.mxu1 %v1535_v9  ;;  %v420_v9 = vld [vmem:[#allocation2 + $0x58] sm:$0xff] }
  0x73   : > { %1318 = vmatpush3.bf16.msra.mxu0 %v1536_v10  ;;  %1435 = vmatpush3.bf16.msra.mxu1 %v1536_v10 }
  0x74   : > { %1319 = vmatprep.subr.bf16.mxu0 %v1537_v11  ;;  %1428 = vmatprep.subr.bf16.mxu1 %v1537_v11 }
  0x77   : > { %1320 = vmatpush3.bf16.msra.mxu0 %v1538_v12  ;;  %1436 = vmatpush3.bf16.msra.mxu1 %v1538_v12 }
  0x78   : > { %1321 = vmatprep.subr.bf16.mxu0 %v1539_v13  ;;  %1429 = vmatprep.subr.bf16.mxu1 %v1539_v13 }
  0x7b   : > { %1322 = vmatpush3.bf16.msra.mxu0 %v1540_v14  ;;  %1437 = vmatpush3.bf16.msra.mxu1 %v1540_v14 }
  0x7c   : > { %1323 = vmatprep.subr.bf16.mxu0 %v1541_v15  ;;  %1430 = vmatprep.subr.bf16.mxu1 %v1541_v15 }
  0x7f   : > { %1324 = vmatpush3.bf16.msra.mxu0 %v1542_v16  ;;  %1438 = vmatpush3.bf16.msra.mxu1 %v1542_v16 }
  0x80   : > { %1325 = vmatprep.subr.bf16.mxu0 %v1543_v17  ;;  %1431 = vmatprep.subr.bf16.mxu1 %v1543_v17 }
  0x83   : > { %1326 = vmatpush3.bf16.msra.mxu0 %v1544_v18  ;;  %1439 = vmatpush3.bf16.msra.mxu1 %v1544_v18 }
  0x84   : > { %1327 = vmatprep.subr.bf16.mxu0 %v1545_v19  ;;  %1432 = vmatprep.subr.bf16.mxu1 %v1545_v19  ;;  %v413_v19 = vld [vmem:[#allocation2 + $0x20] sm:$0xff] }
  0x87   : > { %1328 = vmatpush3.bf16.msra.mxu0 %v1546_v20  ;;  %1440 = vmatpush3.bf16.msra.mxu1 %v1546_v20 }
  0x8a   : > { %554 = vmatmul.mubr.bf16.vlgmr.msra.gmra.mrb[0].mxu0 %v354_v23  ;;  %586 = vmatmul.mubr.bf16.vlgmr.msra.gmra.mrb[0].mxu1 %v362_v24 }
  0x8b   : > { %561 = vmatprep.mubr.bf16.mxu0 %v357_v25  ;;  %593 = vmatprep.mubr.bf16.mxu1 %v365_v26 }
  0x92   : > { %562 = vmatmul.mubr.bf16.gmra.mrb[4].mxu0 %v356_v29  ;;  %594 = vmatmul.mubr.bf16.gmra.mrb[4].mxu1 %v364_v30  ;;  %v422_v29 = vld [vmem:[#allocation2 + $0x68] sm:$0xff] }
  0x93   : > { %569 = vmatprep.mubr.bf16.mxu0 %v359_v31  ;;  %601 = vmatprep.mubr.bf16.mxu1 %v367_v32 }
  0x9a   : > { %570 = vmatmul.mubr.bf16.gmra.mrb[8].mxu0 %v358_v35  ;;  %602 = vmatmul.mubr.bf16.gmra.mrb[8].mxu1 %v366_v36 }
  0x9b   : > { %577 = vmatprep.mubr.bf16.mxu0 %v361_v37  ;;  %609 = vmatprep.mubr.bf16.mxu1 %v369_v38 }
  0xa2   : > { %578 = vmatmul.mubr.bf16.gmra.mrb[12].mxu0 %v360_v39  ;;  %610 = vmatmul.mubr.bf16.gmra.mrb[12].mxu1 %v368_v40  ;;  %v415_v39 = vld [vmem:[#allocation2 + $0x30] sm:$0xff] }
 0x15d   : > { %v1329_v41 = vpop.f32.mrb[0].mxu0  ;;  %v1353_v42 = vpop.f32.mrb[0].mxu1 }
 0x15e   : > { %v1330_v44 = vpop.f32.mrb[1].mxu0  ;;  %v1354_v46 = vpop.f32.mrb[1].mxu1 }
 0x15f   : > { %v1331_v47 = vadd.f32 %v1330_v44, %v1329_v41  ;;  %v1355_v48 = vadd.f32 %v1354_v46, %v1353_v42  ;;  %v1332_v49 = vpop.f32.mrb[2].mxu0  ;;  %v1356_v50 = vpop.f32.mrb[2].mxu1  ;;  %v423_v41 = vld [vmem:[#allocation2 + $0x70] sm:$0xff] }
 0x160   : > { %v1333_v52 = vpop.f32.mrb[3].mxu0  ;;  %v1357_v54 = vpop.f32.mrb[3].mxu1 }
 0x161   : > { %v618_v55 = vadd.f32 %v1331_v47, %v409_v43  ;;  %v626_v56 = vadd.f32 %v1355_v48, %v417_v45  ;;  %v1334_v57 = vadd.f32 %v1333_v52, %v1332_v49  ;;  %v1358_v58 = vadd.f32 %v1357_v54, %v1356_v50  ;;  %v416_v47 = vld [vmem:[#allocation2 + $0x38] sm:$0xff] }
 0x162   : > { %v424_v49 = vld [vmem:[#allocation2 + $0x78] sm:$0xff] }
 0x163   : > { %634 = vst [vmem:[#allocation2] sm:$0xff] %v618_v55  ;;  %642 = vst [vmem:[#allocation2 + $0x40] sm:$0xff] %v626_v56  ;;  %v619_v59 = vadd.f32 %v1334_v57, %v410_v51  ;;  %v627_v60 = vadd.f32 %v1358_v58, %v418_v53 }
 0x165   : > { %635 = vst [vmem:[#allocation2 + $0x8] sm:$0xff] %v619_v59  ;;  %643 = vst [vmem:[#allocation2 + $0x48] sm:$0xff] %v627_v60  ;;  %v1335_v61 = vpop.f32.mrb[4].mxu0  ;;  %v1359_v62 = vpop.f32.mrb[4].mxu1 }
 0x166   : > { %v1336_v0 = vpop.f32.mrb[5].mxu0  ;;  %v1360_v2 = vpop.f32.mrb[5].mxu1 }
 0x167   : > { %v1337_v3 = vadd.f32 %v1336_v0, %v1335_v61  ;;  %v1361_v4 = vadd.f32 %v1360_v2, %v1359_v62  ;;  %v1338_v5 = vpop.f32.mrb[6].mxu0  ;;  %v1362_v6 = vpop.f32.mrb[6].mxu1 }
 0x168   : > { %v1339_v8 = vpop.f32.mrb[7].mxu0  ;;  %v1363_v10 = vpop.f32.mrb[7].mxu1 }
 0x169   : > { %v620_v11 = vadd.f32 %v1337_v3, %v411_v63  ;;  %v628_v12 = vadd.f32 %v1361_v4, %v419_v1  ;;  %v1340_v13 = vadd.f32 %v1339_v8, %v1338_v5  ;;  %v1364_v14 = vadd.f32 %v1363_v10, %v1362_v6 }
 0x16b   : > { %636 = vst [vmem:[#allocation2 + $0x10] sm:$0xff] %v620_v11  ;;  %644 = vst [vmem:[#allocation2 + $0x50] sm:$0xff] %v628_v12  ;;  %v621_v15 = vadd.f32 %v1340_v13, %v412_v7  ;;  %v629_v16 = vadd.f32 %v1364_v14, %v420_v9 }
 0x16d   : > { %637 = vst [vmem:[#allocation2 + $0x18] sm:$0xff] %v621_v15  ;;  %645 = vst [vmem:[#allocation2 + $0x58] sm:$0xff] %v629_v16  ;;  %v1341_v17 = vpop.f32.mrb[8].mxu0  ;;  %v1365_v18 = vpop.f32.mrb[8].mxu1 }
 0x16e   : > { %v1342_v20 = vpop.f32.mrb[9].mxu0  ;;  %v1366_v22 = vpop.f32.mrb[9].mxu1 }
 0x16f   : > { %v1343_v23 = vadd.f32 %v1342_v20, %v1341_v17  ;;  %v1367_v24 = vadd.f32 %v1366_v22, %v1365_v18  ;;  %v1344_v25 = vpop.f32.mrb[10].mxu0  ;;  %v1368_v26 = vpop.f32.mrb[10].mxu1 }
 0x170   : > { %v1345_v28 = vpop.f32.mrb[11].mxu0  ;;  %v1369_v30 = vpop.f32.mrb[11].mxu1 }
 0x171   : > { %v622_v31 = vadd.f32 %v1343_v23, %v413_v19  ;;  %v630_v32 = vadd.f32 %v1367_v24, %v421_v21  ;;  %v1346_v33 = vadd.f32 %v1345_v28, %v1344_v25  ;;  %v1370_v34 = vadd.f32 %v1369_v30, %v1368_v26 }
 0x173   : > { %638 = vst [vmem:[#allocation2 + $0x20] sm:$0xff] %v622_v31  ;;  %646 = vst [vmem:[#allocation2 + $0x60] sm:$0xff] %v630_v32  ;;  %v623_v35 = vadd.f32 %v1346_v33, %v414_v27  ;;  %v631_v36 = vadd.f32 %v1370_v34, %v422_v29 }
 0x175   : > { %639 = vst [vmem:[#allocation2 + $0x28] sm:$0xff] %v623_v35  ;;  %647 = vst [vmem:[#allocation2 + $0x68] sm:$0xff] %v631_v36  ;;  %v1347_v37 = vpop.f32.mrb[12].mxu0  ;;  %v1371_v38 = vpop.f32.mrb[12].mxu1 }
 0x176   : > { %v1348_v40 = vpop.f32.mrb[13].mxu0  ;;  %v1372_v42 = vpop.f32.mrb[13].mxu1 }
 0x177   : > { %v1349_v43 = vadd.f32 %v1348_v40, %v1347_v37  ;;  %v1373_v44 = vadd.f32 %v1372_v42, %v1371_v38  ;;  %v1350_v45 = vpop.f32.mrb[14].mxu0  ;;  %v1374_v46 = vpop.f32.mrb[14].mxu1 }
 0x178   : > { %v1351_v48 = vpop.f32.mrb[15].mxu0  ;;  %v1375_v50 = vpop.f32.mrb[15].mxu1 }
 0x179   : > { %v624_v51 = vadd.f32 %v1349_v43, %v415_v39  ;;  %v632_v52 = vadd.f32 %v1373_v44, %v423_v41  ;;  %v1352_v53 = vadd.f32 %v1351_v48, %v1350_v45  ;;  %v1376_v54 = vadd.f32 %v1375_v50, %v1374_v46 }
 0x17b   : > { %640 = vst [vmem:[#allocation2 + $0x30] sm:$0xff] %v624_v51  ;;  %648 = vst [vmem:[#allocation2 + $0x70] sm:$0xff] %v632_v52  ;;  %v625_v55 = vadd.f32 %v1352_v53, %v416_v47  ;;  %v633_v56 = vadd.f32 %v1376_v54, %v424_v49 }
 0x17d   : > { %641 = vst [vmem:[#allocation2 + $0x38] sm:$0xff] %v625_v55  ;;  %649 = vst [vmem:[#allocation2 + $0x78] sm:$0xff] %v633_v56 }
 0x17e PF: > { %v661_v57 = vld [vmem:[%s1860_s25 + $0x40] sm:$0xff]  ;;  %v1701_v59 = vmov 0   ;;  %v662_v60 = vld [vmem:[%s1860_s25 + $0x48] sm:$0xff]  ;;  %v656_v62 = vld [vmem:[%s1860_s25 + $0x18] sm:$0xff]  ;;  %s1265_s15 = sshll.u32 %s1685_s12, 10  ;;  %s1083_s16 = sshll.u32 %s1867_s30, 4  ;;  %s2021_s16 = int_to_ptr.vmem [resolvable:$true] %s1083_s16 }
 0x17f   : > { %v653_v58 = vld [vmem:[%s1860_s25] sm:$0xff]  ;;  %1548 = vset.pattern.permute.xlu1 %v1701_v59  ;;  %1547 = vset.pattern.permute.xlu0 %v1701_v59  ;;  %v654_v61 = vld [vmem:[%s1860_s25 + $0x8] sm:$0xff]  ;;  %v655_v63 = vld [vmem:[%s1860_s25 + $0x10] sm:$0xff]  ;;  %s2098_s12 = sand.u32 1, %s1677_s10   ;;  %s1609_s27 = scalar_lea.vmem %s2021_s16, 1024 }
 0x180   : > { %727 = vperm.xlu1 %1548, %v661_v57   ;;  %687 = vperm.xlu0 %1547, %v653_v58   ;;  %v1549_v0 = vld [vmem:[#allocation6] sm:$0xff]   ;;  %v1550_v1 = vld [vmem:[#allocation6 + $0x8] sm:$0xff]   ;;  %v664_v2 = vld [vmem:[%s1860_s25 + $0x58] sm:$0xff]  ;;  %s2027_s28 = scalar_lea.sflag [#allocation8], %s2098_s12  ;;  %p1610_p9 = scmp.ne.s32.totalorder %s2021_s16, %s1609_s27 }
 0x181   : > { %1393 = vmatprep.subr.bf16.mxu0 %v1549_v0  ;;  %1441 = vmatprep.subr.bf16.mxu1 %v1549_v0  ;;  %v663_v3 = vld [vmem:[%s1860_s25 + $0x50] sm:$0xff]  ;;  %v658_v5 = vld [vmem:[%s1860_s25 + $0x28] sm:$0xff]  ;;  %v657_v6 = vld [vmem:[%s1860_s25 + $0x20] sm:$0xff]  ;;  %p2099_p11 = scmp.ne.s32.totalorder %s2089_s19, 0  ;;  %s1702_s29 = smov [#allocation9]  }
 0x182   : > { %1394 = vmatpush3.bf16.msra.mxu0 %v1549_v0  ;;  %1449 = vmatpush3.bf16.msra.mxu1 %v1549_v0  ;;  %v1551_v4 = vld [vmem:[#allocation6 + $0x10] sm:$0xff]   ;;  %v1552_v7 = vld [vmem:[#allocation6 + $0x18] sm:$0xff]   ;;  %v666_v8 = vld [vmem:[%s1860_s25 + $0x68] sm:$0xff]  ;;  %s1613_s5 = sshll.u32 %s1702_s29, 4  ;;  %s1614_s5 = int_to_ptr.vmem [resolvable:$false] %s1613_s5 }
 0x183   : > { %1395 = vmatprep.subr.bf16.mxu0 %v1550_v1  ;;  %1442 = vmatprep.subr.bf16.mxu1 %v1550_v1  ;;  %v665_v9 = vld [vmem:[%s1860_s25 + $0x60] sm:$0xff]  ;;  %v660_v11 = vld [vmem:[%s1860_s25 + $0x38] sm:$0xff]  ;;  %v659_v12 = vld [vmem:[%s1860_s25 + $0x30] sm:$0xff]  ;;  %p1611_p13 = pnand %p1610_p9, %p2099_p11  ;;  %s1615_s17 = scalar_lea.vmem %s1614_s5, 2048 }
 0x184   : > { %732 = vperm.xlu1 %1548, %v662_v60   ;;  %692 = vperm.xlu0 %1547, %v654_v61   ;;  %v1553_v10 = vld [vmem:[#allocation6 + $0x20] sm:$0xff]   ;;  %v1554_v13 = vld [vmem:[#allocation6 + $0x28] sm:$0xff]   ;;  %v668_v14 = vld [vmem:[%s1860_s25 + $0x78] sm:$0xff]  ;;  %p1616_p2 = scmp.lt.s32.totalorder %s2021_s16, %s1614_s5  ;;  %p1617_p3 = scmp.lt.s32.totalorder %s1615_s17, %s1609_s27 }
 0x185   : > { %v667_v15 = vld [vmem:[%s1860_s25 + $0x70] sm:$0xff]  ;;  %v1556_v17 = vld [vmem:[#allocation6 + $0x38] sm:$0xff]   ;;  %v677_v20 = vld [vmem:[#allocation2 + $0x40] sm:$0xff]  ;;  %s2019_s25 = scalar_lea.hbm %s2079_s7, %s1265_s15  ;;  %p1612_p1 = pneg %p1611_p13 }
 0x186   : > { %1396 = vmatpush3.bf16.msra.mxu0 %v1550_v1  ;;  %1450 = vmatpush3.bf16.msra.mxu1 %v1550_v1  ;;  %v1555_v16 = vld [vmem:[#allocation6 + $0x30] sm:$0xff]   ;;  %v669_v21 = vld [vmem:[#allocation2] sm:$0xff]  ;;  %v678_v22 = vld [vmem:[#allocation2 + $0x48] sm:$0xff]  ;;  %p1618_p5 = por %p1617_p3, %p1616_p2 }
 0x187   : > { %1397 = vmatprep.subr.bf16.mxu0 %v1551_v4  ;;  %1443 = vmatprep.subr.bf16.mxu1 %v1551_v4  ;;  %v670_v23 = vld [vmem:[#allocation2 + $0x8] sm:$0xff]  ;;  %v672_v30 = vld [vmem:[#allocation2 + $0x18] sm:$0xff]  ;;  %v671_v31 = vld [vmem:[#allocation2 + $0x10] sm:$0xff] }
 0x188   : > { %702 = vperm.xlu1 %1548, %v656_v62   ;;  %697 = vperm.xlu0 %1547, %v655_v63   ;;  %v680_v38 = vld [vmem:[#allocation2 + $0x58] sm:$0xff]  ;;  %v679_v39 = vld [vmem:[#allocation2 + $0x50] sm:$0xff]  ;;  %v674_v45 = vld [vmem:[#allocation2 + $0x28] sm:$0xff]  ;;  %p1619_p8 = pnand %p1618_p5, %p1612_p1 }
 0x189   : > { %v673_v46 = vld [vmem:[#allocation2 + $0x20] sm:$0xff]  ;;  %v682_v52 = vld [vmem:[#allocation2 + $0x68] sm:$0xff]  ;;  %v676_v59 = vld [vmem:[#allocation2 + $0x38] sm:$0xff] }
 0x18a   : > { %1398 = vmatpush3.bf16.msra.mxu0 %v1551_v4  ;;  %1451 = vmatpush3.bf16.msra.mxu1 %v1551_v4  ;;  %v681_v53 = vld [vmem:[#allocation2 + $0x60] sm:$0xff]  ;;  %v675_v60 = vld [vmem:[#allocation2 + $0x30] sm:$0xff] }
 0x18b   : > { %1399 = vmatprep.subr.bf16.mxu0 %v1552_v7  ;;  %1444 = vmatprep.subr.bf16.mxu1 %v1552_v7 }
 0x18c   : > { %742 = vperm.xlu1 %1548, %v664_v2   ;;  %737 = vperm.xlu0 %1547, %v663_v3   ;;  %v684_v2 = vld [vmem:[#allocation2 + $0x78] sm:$0xff]  ;;  %v683_v3 = vld [vmem:[#allocation2 + $0x70] sm:$0xff] }
 0x18e   : > { %1400 = vmatpush3.bf16.msra.mxu0 %v1552_v7  ;;  %1452 = vmatpush3.bf16.msra.mxu1 %v1552_v7 }
 0x18f   : > { %1401 = vmatprep.subr.bf16.mxu0 %v1553_v10  ;;  %1445 = vmatprep.subr.bf16.mxu1 %v1553_v10 }
 0x190   : > { %712 = vperm.xlu1 %1548, %v658_v5   ;;  %707 = vperm.xlu0 %1547, %v657_v6  }
 0x192   : > { %1402 = vmatpush3.bf16.msra.mxu0 %v1553_v10  ;;  %1453 = vmatpush3.bf16.msra.mxu1 %v1553_v10  ;;  %v1974_v10 = vld [vmem:[%s2078_s6] ss:$0 sm:$0xff] }
 0x193   : > { %1403 = vmatprep.subr.bf16.mxu0 %v1554_v13  ;;  %1446 = vmatprep.subr.bf16.mxu1 %v1554_v13 }
 0x194   : > { %752 = vperm.xlu1 %1548, %v666_v8   ;;  %747 = vperm.xlu0 %1547, %v665_v9  }
 0x196   : > { %1404 = vmatpush3.bf16.msra.mxu0 %v1554_v13  ;;  %1454 = vmatpush3.bf16.msra.mxu1 %v1554_v13 }
 0x197   : > { %1405 = vmatprep.subr.bf16.mxu0 %v1555_v16  ;;  %1447 = vmatprep.subr.bf16.mxu1 %v1555_v16 }
 0x198   : > { %722 = vperm.xlu1 %1548, %v660_v11   ;;  %717 = vperm.xlu0 %1547, %v659_v12  }
 0x19a   : > { %1406 = vmatpush3.bf16.msra.mxu0 %v1555_v16  ;;  %1455 = vmatpush3.bf16.msra.mxu1 %v1555_v16 }
 0x19b   : > { %1407 = vmatprep.subr.bf16.mxu0 %v1556_v17  ;;  %1448 = vmatprep.subr.bf16.mxu1 %v1556_v17 }
 0x19c   : > { %762 = vperm.xlu1 %1548, %v668_v14   ;;  %757 = vperm.xlu0 %1547, %v667_v15  }
 0x19e   : > { %1408 = vmatpush3.bf16.msra.mxu0 %v1556_v17  ;;  %1456 = vmatpush3.bf16.msra.mxu1 %v1556_v17 }
 0x1ff   : > { %v1923_v18 = vpop.permute.xlu1 %727  ;;  %v1925_v19 = vpop.permute.xlu0 %687 }
 0x200   : > { %v773_v26 = vmul.f32 %v1923_v18, %v677_v20  ;;  %v765_v27 = vmul.f32 %v1925_v19, %v669_v21 }
 0x203   : > { %v1927_v24 = vpop.permute.xlu1 %732  ;;  %v1929_v25 = vpop.permute.xlu0 %692 }
 0x204   : > { %v774_v28 = vmul.f32 %v1927_v24, %v678_v22  ;;  %v766_v29 = vmul.f32 %v1929_v25, %v670_v23 }
 0x206   : > { %v781_v32 = vpack.c.bf16 %v766_v29, %v765_v27  ;;  %v785_v33 = vpack.c.bf16 %v774_v28, %v773_v26 }
 0x207   : > { %v1935_v34 = vpop.permute.xlu1 %702  ;;  %v1937_v35 = vpop.permute.xlu0 %697 }
 0x208   : > { %v768_v36 = vmul.f32 %v1935_v34, %v672_v30  ;;  %v767_v37 = vmul.f32 %v1937_v35, %v671_v31  ;;  %1409 = vmatprep.mubr.bf16.mxu0 %v781_v32  ;;  %1417 = vmatprep.mubr.bf16.mxu1 %v785_v33 }
 0x20a   : > { %v782_v40 = vpack.c.bf16 %v768_v36, %v767_v37 }
 0x20b   : > { %v1941_v41 = vpop.permute.xlu1 %742  ;;  %v1943_v42 = vpop.permute.xlu0 %737 }
 0x20c   : > { %v776_v43 = vmul.f32 %v1941_v41, %v680_v38  ;;  %v775_v44 = vmul.f32 %v1943_v42, %v679_v39  ;;  %1410 = vmatmul.mubr.bf16.vlgmr.msra.gmra.mrb[0].mxu0 %v782_v40 }
 0x20e   : > { %v786_v47 = vpack.c.bf16 %v776_v43, %v775_v44 }
 0x20f   : > { %v1947_v48 = vpop.permute.xlu1 %712  ;;  %v1949_v49 = vpop.permute.xlu0 %707 }
 0x210   : > { %v770_v50 = vmul.f32 %v1947_v48, %v674_v45  ;;  %v769_v51 = vmul.f32 %v1949_v49, %v673_v46  ;;  %1418 = vmatmul.mubr.bf16.vlgmr.msra.gmra.mrb[0].mxu1 %v786_v47 }
 0x212   : > { %v783_v54 = vpack.c.bf16 %v770_v50, %v769_v51 }
 0x213   : > { %v1953_v55 = vpop.permute.xlu1 %752  ;;  %v1955_v56 = vpop.permute.xlu0 %747 }
 0x214   : > { %v778_v57 = vmul.f32 %v1953_v55, %v682_v52  ;;  %v777_v58 = vmul.f32 %v1955_v56, %v681_v53  ;;  %1413 = vmatprep.mubr.bf16.mxu0 %v783_v54 }
 0x216   : > { %v787_v61 = vpack.c.bf16 %v778_v57, %v777_v58 }
 0x217   : > { %v1959_v62 = vpop.permute.xlu1 %722  ;;  %v1961_v63 = vpop.permute.xlu0 %717 }
 0x218   : > { %v772_v0 = vmul.f32 %v1959_v62, %v676_v59  ;;  %v771_v1 = vmul.f32 %v1961_v63, %v675_v60  ;;  %1421 = vmatprep.mubr.bf16.mxu1 %v787_v61 }
 0x21a   : > { %v784_v4 = vpack.c.bf16 %v772_v0, %v771_v1 }
 0x21b   : > { %v1965_v5 = vpop.permute.xlu1 %762  ;;  %v1967_v6 = vpop.permute.xlu0 %757 }
 0x21c   : > { %v780_v7 = vmul.f32 %v1965_v5, %v684_v2  ;;  %v779_v8 = vmul.f32 %v1967_v6, %v683_v3  ;;  %1414 = vmatmul.mubr.bf16.gmra.mrb[4].mxu0 %v784_v4 }
 0x21e   : > { %v788_v9 = vpack.c.bf16 %v780_v7, %v779_v8 }
 0x220   : > { %1422 = vmatmul.mubr.bf16.gmra.mrb[4].mxu1 %v788_v9 }
 0x2df   : > { %v1411_v11 = vpop.f32.mrb[0].mxu0 }
 0x2e0   : > { %v903_v12 = vadd.f32 %v1411_v11, %v1974_v10  ;;  %v894_v13 = vpop.f32.mrb[1].mxu0 }
 0x2e1   : > { %v895_v14 = vadd.f32 %v1974_v10, %v894_v13  ;;  %v1412_v15 = vpop.f32.mrb[2].mxu0 }
 0x2e2   : > { %v959_v16 = vmax.f32 %v903_v12, 0.0  ;;  %v906_v17 = vadd.f32 %v1412_v15, %v1974_v10  ;;  %v897_v20 = vpop.f32.mrb[3].mxu0 }
 0x2e3   : > { %v957_v21 = vmax.f32 %v895_v14, 0.0  ;;  %v898_v22 = vadd.f32 %v1974_v10, %v897_v20  ;;  %v1419_v23 = vpop.f32.mrb[0].mxu1 }
 0x2e4   : > { %v960_v26 = vmax.f32 %v906_v17, 0.0  ;;  %v935_v27 = vadd.f32 %v1419_v23, %v1974_v10  ;;  %v926_v28 = vpop.f32.mrb[1].mxu1  ;;  %v975_v32 = vmul.f32 %v959_v16, %v1937_v35 }
 0x2e5   : > { %v958_v29 = vmax.f32 %v898_v22, 0.0  ;;  %v927_v30 = vadd.f32 %v1974_v10, %v926_v28  ;;  %v1420_v31 = vpop.f32.mrb[2].mxu1  ;;  %v973_v39 = vmul.f32 %v957_v21, %v1925_v19 }
 0x2e6   : > { %v976_v33 = vmul.f32 %v960_v26, %v1935_v34  ;;  %v967_v36 = vmax.f32 %v935_v27, 0.0  ;;  %v938_v37 = vadd.f32 %v1420_v31, %v1974_v10  ;;  %v929_v38 = vpop.f32.mrb[3].mxu1 }
 0x2e7   : > { %v974_v40 = vmul.f32 %v958_v29, %v1929_v25  ;;  %v965_v43 = vmax.f32 %v927_v30, 0.0  ;;  %v930_v44 = vadd.f32 %v1974_v10, %v929_v38 }
 0x2e8   : > { %v1274_v45 = vpack.c.bf16 %v976_v33, %v975_v32  ;;  %v968_v46 = vmax.f32 %v938_v37, 0.0  ;;  %v983_v34 = vmul.f32 %v967_v36, %v1943_v42 }
 0x2e9   : > { %v1269_v47 = vpack.c.bf16 %v974_v40, %v973_v39  ;;  %v966_v35 = vmax.f32 %v930_v44, 0.0  ;;  %v981_v51 = vmul.f32 %v965_v43, %v1923_v18 }
 0x2ea   : > { %1306 = vst [vmem:[%s1867_s30 + $0x8] sm:$0xff] %v1274_v45   ;;  %v984_v50 = vmul.f32 %v968_v46, %v1941_v41 }
 0x2eb   : > { %1270 = vst [vmem:[%s1867_s30] sm:$0xff] %v1269_v47   ;;  %v982_v19 = vmul.f32 %v966_v35, %v1927_v24 }
 0x2ec   : > { %v1294_v52 = vpack.c.bf16 %v984_v50, %v983_v34 }
 0x2ed   : > { %v1289_v25 = vpack.c.bf16 %v982_v19, %v981_v51 }
 0x2ee   : > { %1310 = vst [vmem:[%s1867_s30 + $0x28] sm:$0xff] %v1294_v52  }
 0x2ef   : > { %1309 = vst [vmem:[%s1867_s30 + $0x20] sm:$0xff] %v1289_v25   ;;  %v1415_v53 = vpop.f32.mrb[4].mxu0 }
 0x2f0   : > { %v919_v54 = vadd.f32 %v1415_v53, %v1974_v10  ;;  %v910_v57 = vpop.f32.mrb[5].mxu0 }
 0x2f1   : > { %v911_v58 = vadd.f32 %v1974_v10, %v910_v57  ;;  %v1416_v59 = vpop.f32.mrb[6].mxu0 }
 0x2f2   : > { %v963_v60 = vmax.f32 %v919_v54, 0.0  ;;  %v922_v42 = vadd.f32 %v1416_v59, %v1974_v10  ;;  %v913_v41 = vpop.f32.mrb[7].mxu0 }
 0x2f3   : > { %v961_v61 = vmax.f32 %v911_v58, 0.0  ;;  %v914_v18 = vadd.f32 %v1974_v10, %v913_v41  ;;  %v1423_v0 = vpop.f32.mrb[4].mxu1 }
 0x2f4   : > { %v964_v24 = vmax.f32 %v922_v42, 0.0  ;;  %v951_v1 = vadd.f32 %v1423_v0, %v1974_v10  ;;  %v942_v2 = vpop.f32.mrb[5].mxu1  ;;  %v979_v8 = vmul.f32 %v963_v60, %v1961_v63 }
 0x2f5   : > { %v962_v3 = vmax.f32 %v914_v18, 0.0  ;;  %v943_v4 = vadd.f32 %v1974_v10, %v942_v2  ;;  %v1424_v7 = vpop.f32.mrb[6].mxu1  ;;  %v977_v14 = vmul.f32 %v961_v61, %v1949_v49 }
 0x2f6   : > { %v980_v9 = vmul.f32 %v964_v24, %v1959_v62  ;;  %v971_v11 = vmax.f32 %v951_v1, 0.0  ;;  %v954_v12 = vadd.f32 %v1424_v7, %v1974_v10  ;;  %v945_v13 = vpop.f32.mrb[7].mxu1 }
 0x2f7   : > { %v978_v15 = vmul.f32 %v962_v3, %v1947_v48  ;;  %v969_v16 = vmax.f32 %v943_v4, 0.0  ;;  %v946_v17 = vadd.f32 %v1974_v10, %v945_v13 }
 0x2f8   : > { %v1284_v20 = vpack.c.bf16 %v980_v9, %v979_v8  ;;  %v972_v21 = vmax.f32 %v954_v12, 0.0  ;;  %v987_v62 = vmul.f32 %v971_v11, %v1967_v6 }
 0x2f9   : > { %v1279_v22 = vpack.c.bf16 %v978_v15, %v977_v14  ;;  %v970_v63 = vmax.f32 %v946_v17, 0.0  ;;  %v985_v48 = vmul.f32 %v969_v16, %v1955_v56 }
 0x2fa   : > { %1308 = vst [vmem:[%s1867_s30 + $0x18] sm:$0xff] %v1284_v20   ;;  %v988_v49 = vmul.f32 %v972_v21, %v1965_v5 }
 0x2fb   : > { %1307 = vst [vmem:[%s1867_s30 + $0x10] sm:$0xff] %v1279_v22   ;;  %v986_v10 = vmul.f32 %v970_v63, %v1953_v55 }
 0x2fc   : > { %v1304_v23 = vpack.c.bf16 %v988_v49, %v987_v62 }
 0x2fd   : > { %v1299_v26 = vpack.c.bf16 %v986_v10, %v985_v48 }
 0x2fe   : > { %1312 = vst [vmem:[%s1867_s30 + $0x38] sm:$0xff] %v1304_v23  }
 0x2ff   : > { %1311 = vst [vmem:[%s1867_s30 + $0x30] sm:$0xff] %v1299_v26  }
 0x300   : > { %1622 = shalt.err (!%p1619_p8)
}
 0x301   : > { %s1623_s30 = scalar_lea.hbm %s2019_s25, 1024  ;;  %s1627_s23 = scalar_lea.hbm %s2079_s7, 2048 }
 0x302   : > { %p1624_p10 = scmp.ne.s32.totalorder %s2019_s25, %s1623_s30  ;;  %p1628_p4 = scmp.lt.u32.totalorder %s2019_s25, %s2079_s7 }
 0x303   : > { %p1629_p6 = scmp.lt.u32.totalorder %s1627_s23, %s1623_s30  ;;  %p1631_p9 = scmp.lt.u32.totalorder %s1623_s30, %s2019_s25 }
 0x304   : > { %p1625_p12 = pnand %p1624_p10, %p2099_p11 }
 0x305   : > { %p1630_p7 = por %p1629_p6, %p1628_p4 }
 0x306   : > { %p1626_p0 = pneg %p1625_p12 }
 0x307   : > { %p1632_p13 = por %p1631_p9, %p1630_p7 }
 0x309   : > { %p1633_p1 = pnand %p1632_p13, %p1626_p0 }
 0x30b   : > { %1636 = shalt.err (!%p1633_p1)
}
 0x30c   : > { %s1703_s0 = smov 64   ;;  %s1704_s15 = smov 4  }
 0x30d   : > { %1461 = dma.vmem_to_hbm [thread:$0]  (%p2099_p11), %s2021_s16, 1024, %s2019_s25, %s2027_s28, %s1703_s0, %s1703_s0, %s1704_s15  }
 0x30e PF: > { %p1473_p2 = scmp.ge.s32.totalorder %s1693_s14, 2  ;;  %s1098_s18 = sand.u32 1, %s1673_s1  }
 0x30f   : > { %p2100_p3 = scmp.ne.s32.totalorder %s2090_s21, 0  ;;  %s1099_s20 = scalar_lea.sflag [#allocation8], %s1098_s18 }
 0x311   : > { %p1468_p5 = pnand %p1473_p2, %p2100_p3 }
 0x313   : > { %1668 = dma.done.wait (!%p1468_p5), %s1099_s20, 1024  }
 0x314   : > { %1670 = vsyncadd (!%p1468_p5), %s1099_s20, 4294966272  ;;  %s31_s14 = sadd.s32 1, %s1693_s14   ;;  %s2101_s19 = sld [smem:[#allocation13_spill]] }
 0x315   : > { %p28_p8 = scmp.ge.s32.totalorder %s31_s14, 4   ;;  %s2102_s1 = smov %s1677_s10 }
 0x316   : > { %s2103_s10 = smov %s1681_s11  ;;  %s2104_s11 = smov %s1804_s22 }
 0x317   : > { %s2105_s12 = smov %s1689_s13  ;;  %30 = sbr.rel (!%p28_p8) target bundleno = 31 (0x1f), region = 96 }
 0x31a   : > { %s2106_s13 = smov %s2101_s19 }
 0x31e   :  { %1104 = vsyncpa [#allocation7], 1 }
 0x31f   :  { %1106 = vsyncpa [#allocation7 + $0x1], 1 }
 0x320   :  { %1107 = vsyncpa [#allocation8], 1 }
 0x321   :  { %1109 = vsyncpa [#allocation8 + $0x1], 1 }

</bundles_post_ra>
